<compile_context>
chip_gen: v7x
topology: tpu7x:2x2x1
jax: 0.10.0
libtpu: 0.0.40
codegen_flags: <defaults>
</compile_context>

<pallas_src>
import jax
import jax.numpy as jnp
from jax.experimental import pallas as pl
from jax.experimental.pallas import tpu as pltpu


# ----------------------------- kernels ------------------------------------


def _fused_residual_kernel(inner_fn, identity_fn, compute_dtype):
    def kernel(x_ref, o_ref):
        x = x_ref[...].astype(compute_dtype)
        o_ref[...] = (identity_fn(x) + inner_fn(x)).astype(o_ref.dtype)
    return kernel


def _add_kernel(id_ref, fx_ref, o_ref):
    o_ref[...] = (id_ref[...].astype(jnp.float32)
                  + fx_ref[...].astype(jnp.float32)).astype(o_ref.dtype)


# --------------------------- layout helpers --------------------------------


def _sublane_multiple(dtype):
    """Native sublane packing multiple: 8 (f32), 16 (bf16/f16), 32 (int8/fp8)."""
    return {4: 8, 2: 16, 1: 32}.get(jnp.dtype(dtype).itemsize, 8)


def _layout(total, dtype):
    """Pick a lane-dense (rows, lanes) view, padding if needed.

    Returns (rows, lanes, padded_total) with lanes % 128 == 0 and
    rows % sublane_multiple == 0, so every store is an unmasked full vst.
    """
    sub = _sublane_multiple(dtype)
    for lanes in (2048, 1024, 512, 256, 128):
        if total % lanes == 0:
            rows = total // lanes
            if rows % sub == 0:
                return rows, lanes, total
    # Fallback: pad the flattened array up to a full (sub x 512) tile so the
    # lane-dense, pipelined path is kept for every shape.
    lanes = 512
    tile = sub * lanes
    padded = ((total + tile - 1) // tile) * tile
    return padded // lanes, lanes, padded


def _block_rows(rows, lanes, dtype, target_bytes=4 * 1024 * 1024):
    """~4 MiB of input per grid step, sublane-aligned, evenly dividing rows,
    and capped so mid-sized tensors yield >= 4 grid steps (v7x megacore)."""
    sub = _sublane_multiple(dtype)
    if rows <= sub:
        return rows
    itemsize = jnp.dtype(dtype).itemsize
    br = max(sub, (target_bytes // (lanes * itemsize)) // sub * sub)
    br = min(br, rows)
    # Prefer >= 4 grid steps so the "parallel" axis can shard across 2 TCs.
    if rows // br < 4:
        br = max(sub, (rows // 4) // sub * sub)
    # Make br divide rows exactly (rows is a multiple of sub, so this
    # terminates at sub in the worst case) -> no ragged/masked last block.
    while rows % br != 0:
        br -= sub
    return br


# ---------------------------- pallas wrapper --------------------------------


def _elementwise_call(kernel, out_dtype, *arrays, alias_first=False):
    x0 = arrays[0]
    orig_shape = x0.shape
    total = int(x0.size)
    rows, lanes, padded = _layout(total, x0.dtype)

    def prep(a):
        flat = a.reshape(-1)
        if padded != total:
            flat = jnp.pad(flat, (0, padded - total))
        return flat.reshape(rows, lanes)

    arrs2 = [prep(a) for a in arrays]
    br = _block_rows(rows, lanes, x0.dtype)
    spec = pl.BlockSpec((br, lanes), lambda i: (i, 0))

    # Right-size the VMEM limit: double-buffered in/out blocks + margin,
    # clamped to 16-32 MiB (well under v7x's 64 MiB physical per-TC VMEM).
    block_bytes = br * lanes * (
        sum(a.dtype.itemsize for a in arrays) + jnp.dtype(out_dtype).itemsize)
    vmem_limit = int(min(32 * 1024 * 1024,
                         max(16 * 1024 * 1024, 4 * block_bytes)))

    aliases = {}
    if alias_first and arrays[0].dtype == jnp.dtype(out_dtype):
        aliases = {0: 0}  # identity buffer reused as the output buffer

    # TODO(synk): if a profile shows exposed DMA gaps at step boundaries on
    # v7x, add pipeline_mode=pl.Buffered(3) to the BlockSpecs above.
    out = pl.pallas_call(
        kernel,
        out_shape=jax.ShapeDtypeStruct((rows, lanes), out_dtype),
        grid=(rows // br,),
        in_specs=[spec] * len(arrs2),
        out_specs=spec,
        input_output_aliases=aliases,
        compiler_params=pltpu.CompilerParams(
            dimension_semantics=("parallel",),
            vmem_limit_bytes=vmem_limit),
    )(*arrs2)

    flat_out = out.reshape(-1)
    if padded != total:
        flat_out = flat_out[:total]
    return flat_out.reshape(orig_shape)


# ------------------------------ public API ----------------------------------


def residual_block_forward(x, inner_fn, identity_fn=None,
                           compute_dtype=jnp.float32):
    """Pallas ResidualBlock.forward: identity_map(x) + inner_module(x),
    fused into a single HBM pass (one read of x, one write of the result).

    identity_fn=None reproduces the default Identity(). `inner_fn` and
    `identity_fn` must be elementwise / shape-preserving. `compute_dtype`
    selects the in-register math precision (f32 default; bf16 is fine for
    bf16-safe inner fns on v6e/v7x).
    """
    if identity_fn is None:
        identity_fn = lambda v: v
    return _elementwise_call(
        _fused_residual_kernel(inner_fn, identity_fn, compute_dtype),
        x.dtype, x)


def residual_add(identity, inner_out):
    """General (un-fused) path: the ResidualBlock add when inner_module(x) was
    computed outside the kernel (e.g. a convolutional inner module). The
    identity buffer is aliased to the output to avoid an extra allocation."""
    assert identity.shape == inner_out.shape, (identity.shape, inner_out.shape)
    return _elementwise_call(_add_kernel, identity.dtype, identity, inner_out,
                             alias_first=True)


# --------------------------------- demo -------------------------------------


if __name__ == "__main__":
    key = jax.random.PRNGKey(0)

    # ResidualBlock(inner_module=GELU, identity_map=Identity) on an NCHW tensor.
    x = jax.random.normal(key, (2, 4, 16, 16), dtype=jnp.float32)
    inner_fn = jax.nn.gelu
    y = jax.block_until_ready(residual_block_forward(x, inner_fn))
    y_ref = x + inner_fn(x)
    assert y.shape == x.shape, (y.shape, x.shape)
    assert jnp.allclose(y, y_ref, atol=1e-4, rtol=1e-4), float(
        jnp.max(jnp.abs(y - y_ref)))

    # bf16 video-shaped tensor (N, C, D, H, W), native bf16 in-register math.
    k1, k2 = jax.random.split(key)
    xv = jax.random.normal(k1, (2, 4, 8, 16, 16), dtype=jnp.bfloat16)
    yv = jax.block_until_ready(
        residual_block_forward(xv, jnp.tanh, compute_dtype=jnp.bfloat16))
    yv_ref = (xv.astype(jnp.float32)
              + jnp.tanh(xv.astype(jnp.float32))).astype(jnp.bfloat16)
    assert yv.shape == xv.shape
    assert jnp.allclose(yv.astype(jnp.float32), yv_ref.astype(jnp.float32),
                        atol=2e-2, rtol=2e-2)

    # Non-128-divisible shape exercises the pad-and-slice fallback path.
    xo = jax.random.normal(k2, (3, 5, 7, 9), dtype=jnp.float32)
    yo = jax.block_until_ready(residual_block_forward(xo, jax.nn.gelu))
    yo_ref = xo + jax.nn.gelu(xo)
    assert yo.shape == xo.shape
    assert jnp.allclose(yo, yo_ref, atol=1e-4, rtol=1e-4)

    # Un-fused path: inner_module output computed outside the kernel.
    fx = jnp.tanh(x)
    z = jax.block_until_ready(residual_add(x, fx))
    assert jnp.allclose(z, x + fx, atol=1e-5, rtol=1e-5)

    print("KERNEL_OK")
</pallas_src>

<mosaic_0001>
module attributes {stable_mosaic.version = 11 : i64} {
  func.func @kernel(%arg0: i32, %arg1: memref<8x256xf32, #tpu.memory_space<vmem>>, %arg2: memref<8x256xf32, #tpu.memory_space<vmem>>) attributes {dimension_semantics = [#tpu.dimension_semantics<parallel>], iteration_bounds = array<i64: 1>, scalar_prefetch = 0 : i64, scratch_operands = 0 : i64, tpu.core_type = #tpu.core_type<tc>, window_params = [{transform_indices = @transform_0, window_bounds = array<i64: 8, 256>}, {transform_indices = @transform_1, window_bounds = array<i64: 8, 256>}]} {
    %c0 = arith.constant 0 : index
    %c0_0 = arith.constant 0 : index
    %0 = vector.load %arg1[%c0, %c0_0] : memref<8x256xf32, #tpu.memory_space<vmem>>, vector<8x256xf32>
    %1 = arith.mulf %0, %0 : vector<8x256xf32>
    %2 = arith.mulf %0, %1 : vector<8x256xf32>
    %cst = arith.constant 4.471500e-02 : f32
    %3 = vector.broadcast %cst : f32 to vector<8x256xf32>
    %4 = arith.mulf %3, %2 : vector<8x256xf32>
    %5 = arith.addf %0, %4 : vector<8x256xf32>
    %cst_1 = arith.constant 0.797884583 : f32
    %6 = vector.broadcast %cst_1 : f32 to vector<8x256xf32>
    %7 = arith.mulf %6, %5 : vector<8x256xf32>
    %8 = math.tanh %7 : vector<8x256xf32>
    %cst_2 = arith.constant 1.000000e+00 : f32
    %9 = vector.broadcast %cst_2 : f32 to vector<8x256xf32>
    %10 = arith.addf %9, %8 : vector<8x256xf32>
    %cst_3 = arith.constant 5.000000e-01 : f32
    %11 = vector.broadcast %cst_3 : f32 to vector<8x256xf32>
    %12 = arith.mulf %11, %10 : vector<8x256xf32>
    %13 = arith.mulf %0, %12 : vector<8x256xf32>
    %14 = arith.addf %0, %13 : vector<8x256xf32>
    %c0_4 = arith.constant 0 : index
    %c0_5 = arith.constant 0 : index
    %15 = vector.load %arg2[%c0_4, %c0_5] : memref<8x256xf32, #tpu.memory_space<vmem>>, vector<8x256xf32>
    tpu.vector_store %arg2[%c0_4, %c0_5], %14 {strides = array<i32>} : memref<8x256xf32, #tpu.memory_space<vmem>>, vector<8x256xf32>,
    return
  }
  func.func @transform_0(%arg0: i32) -> (i32, i32) {
    %c0_i32 = arith.constant 0 : i32
    %c0_i32_0 = arith.constant 0 : i32
    return %arg0, %c0_i32 : i32, i32
  }
  func.func @transform_1(%arg0: i32) -> (i32, i32) {
    %c0_i32 = arith.constant 0 : i32
    %c0_i32_0 = arith.constant 0 : i32
    return %arg0, %c0_i32 : i32, i32
  }
}

</mosaic_0001>

<bundles_post_ra>
// kernel: tpu_custom_call.1
= control target key start
LH: loop header
LB: loop body
LE: loop exit
PB: predicated region body
PF: predicated region fallthrough
CT: control target
= control target key end

     0   :  { %6 = vsyncpa [#allocation3], 0  ;;  %s150_s0 = inlined_call_operand.hbm [shape: f32[8,256], index: 0, kind: input, shape index: {}]   ;;  %s151_s1 = inlined_call_operand.hbm [shape: f32[8,256], index: 1, kind: output, shape index: {}]  }
   0x1   :  { %7 = vsyncpa [#allocation4], 0  ;;  %s114_s6 = smov [#allocation2]   ;;  %s66_s10 = scalar_lea.hbm %s150_s0, 256 }
   0x2   :  { %s14_s7 = sshll.u32 %s114_s6, 4  ;;  %p67_p0 = scmp.ne.s32.totalorder %s150_s0, %s66_s10  ;;  %s15_s7 = int_to_ptr.vmem [resolvable:$true] %s14_s7 }
   0x3   :  { %p70_p1 = scmp.lt.u32.totalorder %s66_s10, %s150_s0 }
   0x5   :  { %p72_p2 = pnand %p70_p1, %p67_p0 }
   0x7   :  { %75 = shalt.err (!%p72_p2)
}
   0x8   :  { %s76_s15 = scalar_lea.vmem %s15_s7, 256  ;;  %p81_p4 = scmp.lt.s32.totalorder %s15_s7, %s15_s7 }
   0x9   :  { %p77_p3 = scmp.ne.s32.totalorder %s15_s7, %s76_s15  ;;  %p82_p5 = scmp.lt.s32.totalorder %s76_s15, %s76_s15 }
   0xb   :  { %p83_p6 = por %p82_p5, %p81_p4 }
   0xd   :  { %p84_p7 = pnand %p83_p6, %p77_p3 }
   0xf   :  { %87 = shalt.err (!%p84_p7)
}
  0x10   :  { %17 = dma.hbm_to_vmem [thread:$0]  %s150_s0, 256, %s15_s7, [#allocation3]  }
  0x11   :  { %110 = dma.done.wait [#allocation3], 256  }
  0x12   :  { %111 = vsyncadd [#allocation3], 4294967040  ;;  %v21_v0 = vld [vmem:[#allocation2] sm:$0xff]  ;;  %v22_v1 = vld [vmem:[#allocation2 + $0x8] sm:$0xff]  ;;  %s115_s0 = smov [#allocation5]  }
  0x13   :  { %v23_v2 = vmul.f32 %v21_v0, %v21_v0  ;;  %v24_v3 = vmul.f32 %v22_v1, %v22_v1  ;;  %s51_s18 = sshll.u32 %s115_s0, 4  ;;  %s52_s18 = int_to_ptr.vmem [resolvable:$true] %s51_s18 }
  0x14   :  { %s88_s19 = scalar_lea.vmem %s52_s18, 256  ;;  %p93_p9 = scmp.lt.s32.totalorder %s52_s18, %s52_s18 }
  0x15   :  { %v25_v4 = vmul.f32 %v23_v2, %v21_v0  ;;  %v26_v5 = vmul.f32 %v24_v3, %v22_v1  ;;  %p89_p8 = scmp.ne.s32.totalorder %s52_s18, %s88_s19  ;;  %p94_p10 = scmp.lt.s32.totalorder %s88_s19, %s88_s19 }
  0x17   :  { %v27_v6 = vmul.f32 0.044715, %v25_v4  ;;  %v28_v7 = vmul.f32 0.044715, %v26_v5  ;;  %p95_p11 = por %p94_p10, %p93_p9 }
  0x19   :  { %v29_v8 = vadd.f32 %v27_v6, %v21_v0  ;;  %v30_v9 = vadd.f32 %v28_v7, %v22_v1  ;;  %p96_p12 = pnand %p95_p11, %p89_p8 }
  0x1b   :  { %v31_v10 = vmul.f32 0.7978846, %v29_v8  ;;  %v32_v11 = vmul.f32 0.7978846, %v30_v9 }
  0x1d   :  { %62 = vtanh.f32 %v31_v10 }
  0x1e   :  { %64 = vtanh.f32 %v32_v11 }
  0x27   :  { %v63_v12 = vpop.eup %62 }
  0x28   :  { %v65_v13 = vpop.eup %64  ;;  %v35_v14 = vadd.f32 1.0, %v63_v12 }
  0x29   :  { %v36_v15 = vadd.f32 1.0, %v65_v13 }
  0x2a   :  { %v37_v16 = vmul.f32 0.5, %v35_v14 }
  0x2b   :  { %v38_v17 = vmul.f32 0.5, %v36_v15 }
  0x2c   :  { %v39_v18 = vmul.f32 %v37_v16, %v21_v0 }
  0x2d   :  { %v40_v19 = vmul.f32 %v38_v17, %v22_v1 }
  0x2e   :  { %v41_v20 = vadd.f32 %v39_v18, %v21_v0 }
  0x2f   :  { %v42_v21 = vadd.f32 %v40_v19, %v22_v1 }
  0x30   :  { %43 = vst [vmem:[#allocation5] sm:$0xff] %v41_v20 }
  0x31   :  { %44 = vst [vmem:[#allocation5 + $0x8] sm:$0xff] %v42_v21 }
  0x32   :  { %99 = shalt.err (!%p96_p12)
}
  0x33   :  { %s100_s22 = scalar_lea.hbm %s151_s1, 256 }
  0x34   :  { %p101_p13 = scmp.ne.s32.totalorder %s151_s1, %s100_s22  ;;  %p104_p0 = scmp.lt.u32.totalorder %s100_s22, %s151_s1 }
  0x36   :  { %p106_p1 = pnand %p104_p0, %p101_p13 }
  0x38   :  { %109 = shalt.err (!%p106_p1)
}
  0x39   :  { %54 = dma.vmem_to_hbm [thread:$0]  %s52_s18, 256, %s151_s1, [#allocation4]  }
  0x3a   :  { %112 = dma.done.wait [#allocation4], 256  }
  0x3b   :  { %113 = vsyncadd [#allocation4], 4294967040 }
  0x3c   :  { %58 = vsyncpa [#allocation3], 1 }
  0x3d   :  { %59 = vsyncpa [#allocation4], 1 }

</bundles_post_ra>
